<compile_context>
chip_gen: v5e
topology: v5e:2x2
jax: 0.10.0
libtpu: 0.0.40
codegen_flags: <defaults>
</compile_context>

<pallas_src>
import math
import numpy as np
import jax
import jax.numpy as jnp
from jax.experimental import pallas as pl
from jax.experimental.pallas import tpu as pltpu

_NEG = -0.7 * float(np.finfo(np.float32).max)   # finite "-inf" (avoids NaN on all-pad rows)


def _pick_tiles(B, S, D, src_budget_bytes=8 * 1024 * 1024):
    """tile_b: full batch when small (else 128-row chunks). tile_s: sized so one
    (tile_s, tile_b, D) f32 src tile stays under ~8 MiB, preferring an exact divisor
    of S so no ragged tail is needed."""
    tile_b = B if B <= 128 else 128
    elems = max(1, src_budget_bytes // 4)
    ts_cap = max(8, elems // max(1, tile_b * D))
    if S <= ts_cap:
        return tile_b, S
    ts_cap = max(8, (ts_cap // 8) * 8)
    for cand in range(ts_cap, 7, -8):             # prefer a divisor -> no ragged tail
        if S % cand == 0:
            return tile_b, cand
    return tile_b, ts_cap


def _make_kernel(S, tile_s, ragged_s):
    def kernel(inp_ref, wt_ref, bias_ref, src_ref, madd_ref,
               out_x_ref, out_e_ref,
               proj_s, m_s, l_s, acc_s):
        j = pl.program_id(1)
        ns = pl.num_programs(1)

        @pl.when(j == 0)
        def _init():
            # weight-normed projection: (tile_b, D) @ (D, D) on the MXU (B rows on M).
            proj_s[...] = (jnp.dot(inp_ref[...], wt_ref[...],
                                   preferred_element_type=jnp.float32)
                           + bias_ref[...])
            m_s[...] = jnp.full(m_s.shape, _NEG, jnp.float32)
            l_s[...] = jnp.zeros(l_s.shape, jnp.float32)
            acc_s[...] = jnp.zeros(acc_s.shape, jnp.float32)

        src = src_ref[...].astype(jnp.float32)                # (ts, tb, D)
        if ragged_s:
            # guard the overhanging rows of the last S tile (unspecified VMEM contents)
            rows = j * tile_s + jax.lax.broadcasted_iota(jnp.int32, src.shape, 0)
            src = jnp.where(rows < S, src, 0.0)

        # attention energies e[s, b] = sum_d proj[b, d] * src[s, b, d]
        #   -> VPU multiply + lane reduce (no M=1 batched matmul).
        prod = src * proj_s[...][None, :, :]                  # (ts, tb, D)
        e = jnp.sum(prod, axis=-1, keepdims=True) + madd_ref[...]   # (ts, tb, 1)
        if ragged_s:
            rows1 = j * tile_s + jax.lax.broadcasted_iota(jnp.int32, e.shape, 0)
            e = jnp.where(rows1 < S, e, _NEG)
        out_e_ref[...] = e                                    # masked energies, per tile

        # online softmax running statistics (per batch column)
        m_prev = m_s[...]                                     # (1, tb, 1)
        m_new = jnp.maximum(m_prev, jnp.max(e, axis=0, keepdims=True))
        alpha = jnp.exp(m_prev - m_new)
        p = jnp.exp(e - m_new)                                # (ts, tb, 1)
        l_s[...] = alpha * l_s[...] + jnp.sum(p, axis=0, keepdims=True)
        acc_s[...] = alpha[0] * acc_s[...] + jnp.sum(p * src, axis=0)   # (tb, D) VPU
        m_s[...] = m_new

        @pl.when(j == ns - 1)
        def _finalize():
            # exact divide (one per output row, last step only) - the approx EUP
            # reciprocal was the source of the earlier 0.4% per-row error.
            out_x_ref[...] = (acc_s[...] / l_s[0]).astype(out_x_ref.dtype)

    return kernel


def general_attention_layer(input_bd, source_hids_sbd, encoder_padding_mask_bs,
                            weight_v, weight_g, bias, *, tile_s=None):
    """Mirrors GeneralAttentionLayer.forward.

    input_bd:                (B, D)    float
    source_hids_sbd:         (S, B, D) float   (native fairseq layout, NOT transposed)
    encoder_padding_mask_bs: (B, S)    bool or None (True == pad)
    weight_v, weight_g:      weight-norm params, v (D, D), g (D, 1)
    bias:                    (D,)
    Returns (x, attn_weights) with shapes (B, D) and (1, S, B).
    """
    B, D = input_bd.shape
    S = source_hids_sbd.shape[0]

    # weight_norm (norm over input features per output row): W = g * v / ||v||_row.
    # Pre-transpose in the wrapper (free: W is materialized here anyway).
    v_norm = jnp.sqrt(jnp.sum(weight_v * weight_v, axis=1, keepdims=True))
    w_t = ((weight_g * weight_v) / v_norm).T.astype(jnp.float32)       # (D_in, D_out)
    bias2d = bias.reshape(1, D).astype(jnp.float32)

    tile_b, ts = _pick_tiles(B, S, D)
    if tile_s is not None:            # test hook to force multi-tile / ragged paths
        ts = int(tile_s)
    nb = pl.cdiv(B, tile_b)
    ns = pl.cdiv(S, ts)
    S_pad = ns * ts
    ragged_s = (S_pad != S)

    # additive padding mask in the kernel-native (S, B, 1) layout (tiny tensor)
    if encoder_padding_mask_bs is None:
        madd2 = jnp.zeros((S, B), jnp.float32)
    else:
        madd2 = jnp.where(encoder_padding_mask_bs, _NEG, 0.0).astype(jnp.float32).T
    if ragged_s:
        madd2 = jnp.pad(madd2, ((0, S_pad - S), (0, 0)), constant_values=_NEG)
    madd = madd2[:, :, None]                                           # (S_pad, B, 1)

    grid_spec = pltpu.PrefetchScalarGridSpec(
        num_scalar_prefetch=0,
        grid=(nb, ns),
        in_specs=[
            pl.BlockSpec((tile_b, D), lambda i, j: (i, 0)),            # input
            pl.BlockSpec((D, D), lambda i, j: (0, 0)),                 # W^T
            pl.BlockSpec((1, D), lambda i, j: (0, 0)),                 # bias
            pl.BlockSpec((ts, tile_b, D), lambda i, j: (j, i, 0)),     # source_hids (S,B,D)
            pl.BlockSpec((ts, tile_b, 1), lambda i, j: (j, i, 0)),     # additive mask
        ],
        out_specs=[
            pl.BlockSpec((tile_b, D), lambda i, j: (i, 0)),            # out_x (resident over j)
            pl.BlockSpec((ts, tile_b, 1), lambda i, j: (j, i, 0)),     # masked energies
        ],
        scratch_shapes=[
            pltpu.VMEM((tile_b, D), jnp.float32),                      # projected query
            pltpu.VMEM((1, tile_b, 1), jnp.float32),                   # running max
            pltpu.VMEM((1, tile_b, 1), jnp.float32),                   # running denom
            pltpu.VMEM((tile_b, D), jnp.float32),                      # weighted-sum acc
        ],
    )

    cost = pl.CostEstimate(
        flops=2 * B * D * D + 4 * S * B * D,
        transcendentals=2 * S * B,
        bytes_accessed=4 * (S * B * D + B * D + D * D + D + 2 * S_pad * B + B * D),
    )

    out_x, energies = pl.pallas_call(
        _make_kernel(S, ts, ragged_s),
        out_shape=(jax.ShapeDtypeStruct((B, D), jnp.float32),
                   jax.ShapeDtypeStruct((S_pad, B, 1), jnp.float32)),
        grid_spec=grid_spec,
        compiler_params=pltpu.CompilerParams(
            dimension_semantics=("parallel", "arbitrary"),
            vmem_limit_bytes=64 * 1024 * 1024,
        ),
        cost_estimate=cost,
    )(input_bd.astype(jnp.float32), w_t, bias2d, source_hids_sbd, madd)

    # Final O(S*B) normalization of the returned attention map (D-times smaller than the
    # main S*B*D stream; the heavy work already ran in-kernel with online softmax).
    e_sb = energies[:S, :, 0]                                          # (S, B)
    attn_weights = jax.nn.softmax(e_sb, axis=0)[None, :, :]            # (1, S, B)
    return out_x, attn_weights


def _reference(inp, src_sbd, mask_bs, weight_v, weight_g, bias):
    v_norm = jnp.sqrt(jnp.sum(weight_v ** 2, axis=1, keepdims=True))
    w = weight_g * weight_v / v_norm
    proj = inp @ w.T + bias
    src_bsd = jnp.transpose(src_sbd, (1, 0, 2))
    e = jnp.einsum("bd,bsd->bs", proj, src_bsd)
    if mask_bs is not None:
        e = jnp.where(mask_bs, -jnp.inf, e)
    p = jax.nn.softmax(e, axis=1)
    x = jnp.einsum("bs,bsd->bd", p, src_bsd)
    return x, jnp.transpose(p)[None, :, :]


if __name__ == "__main__":
    key = jax.random.PRNGKey(0)

    def run_case(B, S, D, with_mask=True, tile_s=None, seed_offset=0):
        ks = jax.random.split(jax.random.fold_in(key, seed_offset), 3)
        inp = jax.random.normal(ks[0], (B, D), dtype=jnp.float32)
        src = jax.random.normal(ks[1], (S, B, D), dtype=jnp.float32)
        mask = None
        if with_mask:
            mask = jnp.zeros((B, S), dtype=bool).at[B - 1, S - 3:].set(True)
            mask = mask.at[0, S - 1].set(True)
        weight_v = jax.random.normal(ks[2], (D, D), dtype=jnp.float32) * math.sqrt(1.0 / D)
        weight_g = jnp.sqrt(jnp.sum(weight_v * weight_v, axis=1, keepdims=True))  # (D, 1)
        bias = jnp.zeros((D,), dtype=jnp.float32)

        x_out, attn = general_attention_layer(inp, src, mask, weight_v, weight_g, bias,
                                              tile_s=tile_s)
        jax.block_until_ready((x_out, attn))
        x_ref, attn_ref = _reference(inp, src, mask, weight_v, weight_g, bias)

        assert x_out.shape == (B, D) and attn.shape == (1, S, B)
        # out_x tolerance: online-softmax accumulation order vs the two-pass reference.
        np.testing.assert_allclose(np.asarray(x_out), np.asarray(x_ref),
                                   rtol=2e-3, atol=2e-3)
        np.testing.assert_allclose(np.asarray(attn), np.asarray(attn_ref),
                                   rtol=1e-4, atol=1e-5)

    # small single-tile case (+ mask=None path)
    run_case(B=4, S=16, D=32, with_mask=True, seed_offset=0)
    run_case(B=4, S=16, D=32, with_mask=False, seed_offset=1)
    # multi-tile S: exercises the online-softmax reduction grid (4 S-steps)
    run_case(B=4, S=64, D=32, with_mask=True, tile_s=16, seed_offset=2)
    # ragged S tail (S not a multiple of tile_s): exercises the edge-tile guards
    run_case(B=4, S=40, D=32, with_mask=True, tile_s=16, seed_offset=3)

    print("KERNEL_OK")
</pallas_src>

<mosaic_0001>
module attributes {stable_mosaic.version = 11 : i64} {
  func.func @kernel(%arg0: i32, %arg1: i32, %arg2: memref<4x32xf32, #tpu.memory_space<vmem>>, %arg3: memref<32x32xf32, #tpu.memory_space<vmem>>, %arg4: memref<1x32xf32, #tpu.memory_space<vmem>>, %arg5: memref<16x4x32xf32, #tpu.memory_space<vmem>>, %arg6: memref<16x4x1xf32, #tpu.memory_space<vmem>>, %arg7: memref<4x32xf32, #tpu.memory_space<vmem>>, %arg8: memref<16x4x1xf32, #tpu.memory_space<vmem>>, %arg9: memref<4x32xf32, #tpu.memory_space<vmem>>, %arg10: memref<1x4x1xf32, #tpu.memory_space<vmem>>, %arg11: memref<1x4x1xf32, #tpu.memory_space<vmem>>, %arg12: memref<4x32xf32, #tpu.memory_space<vmem>>) attributes {dimension_semantics = [#tpu.dimension_semantics<parallel>, #tpu.dimension_semantics<arbitrary>], iteration_bounds = array<i64: 1, 1>, scalar_prefetch = 0 : i64, scratch_operands = 4 : i64, tpu.core_type = #tpu.core_type<tc>, window_params = [{transform_indices = @transform_0, window_bounds = array<i64: 4, 32>}, {pipeline_mode = #tpu.pipeline_mode<synchronous>, transform_indices = @transform_1, window_bounds = array<i64: 32, 32>}, {pipeline_mode = #tpu.pipeline_mode<synchronous>, transform_indices = @transform_2, window_bounds = array<i64: 1, 32>}, {transform_indices = @transform_3, window_bounds = array<i64: 16, 4, 32>}, {transform_indices = @transform_4, window_bounds = array<i64: 16, 4, 1>}, {transform_indices = @transform_5, window_bounds = array<i64: 4, 32>}, {transform_indices = @transform_6, window_bounds = array<i64: 16, 4, 1>}]} {
    %c0_i32 = arith.constant 0 : i32
    %0 = arith.cmpi eq, %arg1, %c0_i32 : i32
    %1 = arith.extui %0 : i1 to i32
    %c0_i32_0 = arith.constant 0 : i32
    %2 = arith.cmpi ne, %1, %c0_i32_0 : i32
    scf.if %2 {
      %c0_32 = arith.constant 0 : index
      %c0_33 = arith.constant 0 : index
      %41 = vector.load %arg2[%c0_32, %c0_33] : memref<4x32xf32, #tpu.memory_space<vmem>>, vector<4x32xf32>
      %c0_34 = arith.constant 0 : index
      %c0_35 = arith.constant 0 : index
      %42 = vector.load %arg3[%c0_34, %c0_35] : memref<32x32xf32, #tpu.memory_space<vmem>>, vector<32x32xf32>
      %cst_36 = arith.constant dense<0.000000e+00> : vector<4x32xf32>
      %43 = tpu.matmul %41, %42, %cst_36 {dimension_numbers = #tpu.dot_dimension_numbers<[1], [0], [0], [1], [0, 0, 1, 1], [], []>} : vector<4x32xf32>, vector<32x32xf32>, vector<4x32xf32> -> vector<4x32xf32>
      %c0_37 = arith.constant 0 : index
      %c0_38 = arith.constant 0 : index
      %44 = vector.load %arg4[%c0_37, %c0_38] : memref<1x32xf32, #tpu.memory_space<vmem>>, vector<1x32xf32>
      %45 = vector.broadcast %44 : vector<1x32xf32> to vector<4x32xf32>
      %46 = arith.addf %43, %45 : vector<4x32xf32>
      %c0_39 = arith.constant 0 : index
      %c0_40 = arith.constant 0 : index
      %47 = vector.load %arg9[%c0_39, %c0_40] : memref<4x32xf32, #tpu.memory_space<vmem>>, vector<4x32xf32>
      tpu.vector_store %arg9[%c0_39, %c0_40], %46 {strides = array<i32>} : memref<4x32xf32, #tpu.memory_space<vmem>>, vector<4x32xf32>,
      %cst_41 = arith.constant -2.38197633E+38 : f32
      %48 = vector.broadcast %cst_41 : f32 to vector<1x4x1xf32>
      %c0_42 = arith.constant 0 : index
      %c0_43 = arith.constant 0 : index
      %c0_44 = arith.constant 0 : index
      %49 = vector.load %arg10[%c0_42, %c0_43, %c0_44] : memref<1x4x1xf32, #tpu.memory_space<vmem>>, vector<1x4x1xf32>
      tpu.vector_store %arg10[%c0_42, %c0_43, %c0_44], %48 {strides = array<i32>} : memref<1x4x1xf32, #tpu.memory_space<vmem>>, vector<1x4x1xf32>,
      %cst_45 = arith.constant 0.000000e+00 : f32
      %50 = vector.broadcast %cst_45 : f32 to vector<1x4x1xf32>
      %c0_46 = arith.constant 0 : index
      %c0_47 = arith.constant 0 : index
      %c0_48 = arith.constant 0 : index
      %51 = vector.load %arg11[%c0_46, %c0_47, %c0_48] : memref<1x4x1xf32, #tpu.memory_space<vmem>>, vector<1x4x1xf32>
      tpu.vector_store %arg11[%c0_46, %c0_47, %c0_48], %50 {strides = array<i32>} : memref<1x4x1xf32, #tpu.memory_space<vmem>>, vector<1x4x1xf32>,
      %cst_49 = arith.constant 0.000000e+00 : f32
      %52 = vector.broadcast %cst_49 : f32 to vector<4x32xf32>
      %c0_50 = arith.constant 0 : index
      %c0_51 = arith.constant 0 : index
      %53 = vector.load %arg12[%c0_50, %c0_51] : memref<4x32xf32, #tpu.memory_space<vmem>>, vector<4x32xf32>
      tpu.vector_store %arg12[%c0_50, %c0_51], %52 {strides = array<i32>} : memref<4x32xf32, #tpu.memory_space<vmem>>, vector<4x32xf32>,
    } else {
    }
    %c0 = arith.constant 0 : index
    %c0_1 = arith.constant 0 : index
    %c0_2 = arith.constant 0 : index
    %3 = vector.load %arg5[%c0, %c0_1, %c0_2] : memref<16x4x32xf32, #tpu.memory_space<vmem>>, vector<16x4x32xf32>
    %c0_3 = arith.constant 0 : index
    %c0_4 = arith.constant 0 : index
    %4 = vector.load %arg9[%c0_3, %c0_4] : memref<4x32xf32, #tpu.memory_space<vmem>>, vector<4x32xf32>
    %5 = vector.shape_cast %4 : vector<4x32xf32> to vector<1x4x32xf32>
    %6 = vector.broadcast %5 : vector<1x4x32xf32> to vector<16x4x32xf32>
    %7 = arith.mulf %3, %6 : vector<16x4x32xf32>
    %cst = arith.constant dense<0.000000e+00> : vector<16x4xf32>
    %8 = vector.multi_reduction <add>, %7, %cst [2] : vector<16x4x32xf32> to vector<16x4xf32>
    %9 = vector.shape_cast %8 : vector<16x4xf32> to vector<16x4x1xf32>
    %c0_5 = arith.constant 0 : index
    %c0_6 = arith.constant 0 : index
    %c0_7 = arith.constant 0 : index
    %10 = vector.load %arg6[%c0_5, %c0_6, %c0_7] : memref<16x4x1xf32, #tpu.memory_space<vmem>>, vector<16x4x1xf32>
    %11 = arith.addf %9, %10 : vector<16x4x1xf32>
    %c0_8 = arith.constant 0 : index
    %c0_9 = arith.constant 0 : index
    %c0_10 = arith.constant 0 : index
    %12 = vector.load %arg8[%c0_8, %c0_9, %c0_10] : memref<16x4x1xf32, #tpu.memory_space<vmem>>, vector<16x4x1xf32>
    tpu.vector_store %arg8[%c0_8, %c0_9, %c0_10], %11 {strides = array<i32>} : memref<16x4x1xf32, #tpu.memory_space<vmem>>, vector<16x4x1xf32>,
    %c0_11 = arith.constant 0 : index
    %c0_12 = arith.constant 0 : index
    %c0_13 = arith.constant 0 : index
    %13 = vector.load %arg10[%c0_11, %c0_12, %c0_13] : memref<1x4x1xf32, #tpu.memory_space<vmem>>, vector<1x4x1xf32>
    %cst_14 = arith.constant dense<0xFF800000> : vector<4x1xf32>
    %14 = vector.multi_reduction <maximumf>, %11, %cst_14 [0] : vector<16x4x1xf32> to vector<4x1xf32>
    %15 = vector.shape_cast %14 : vector<4x1xf32> to vector<1x4x1xf32>
    %16 = arith.maximumf %13, %15 : vector<1x4x1xf32>
    %17 = arith.subf %13, %16 : vector<1x4x1xf32>
    %18 = math.exp %17 : vector<1x4x1xf32>
    %19 = vector.broadcast %16 : vector<1x4x1xf32> to vector<16x4x1xf32>
    %20 = arith.subf %11, %19 : vector<16x4x1xf32>
    %21 = math.exp %20 : vector<16x4x1xf32>
    %c0_15 = arith.constant 0 : index
    %c0_16 = arith.constant 0 : index
    %c0_17 = arith.constant 0 : index
    %22 = vector.load %arg11[%c0_15, %c0_16, %c0_17] : memref<1x4x1xf32, #tpu.memory_space<vmem>>, vector<1x4x1xf32>
    %23 = arith.mulf %18, %22 : vector<1x4x1xf32>
    %cst_18 = arith.constant dense<0.000000e+00> : vector<4x1xf32>
    %24 = vector.multi_reduction <add>, %21, %cst_18 [0] : vector<16x4x1xf32> to vector<4x1xf32>
    %25 = vector.shape_cast %24 : vector<4x1xf32> to vector<1x4x1xf32>
    %26 = arith.addf %23, %25 : vector<1x4x1xf32>
    %c0_19 = arith.constant 0 : index
    %c0_20 = arith.constant 0 : index
    %c0_21 = arith.constant 0 : index
    %27 = vector.load %arg11[%c0_19, %c0_20, %c0_21] : memref<1x4x1xf32, #tpu.memory_space<vmem>>, vector<1x4x1xf32>
    tpu.vector_store %arg11[%c0_19, %c0_20, %c0_21], %26 {strides = array<i32>} : memref<1x4x1xf32, #tpu.memory_space<vmem>>, vector<1x4x1xf32>,
    %28 = vector.shape_cast %18 : vector<1x4x1xf32> to vector<4x1xf32>
    %c0_22 = arith.constant 0 : index
    %c0_23 = arith.constant 0 : index
    %29 = vector.load %arg12[%c0_22, %c0_23] : memref<4x32xf32, #tpu.memory_space<vmem>>, vector<4x32xf32>
    %30 = vector.broadcast %28 : vector<4x1xf32> to vector<4x32xf32>
    %31 = arith.mulf %30, %29 : vector<4x32xf32>
    %32 = vector.broadcast %21 : vector<16x4x1xf32> to vector<16x4x32xf32>
    %33 = arith.mulf %32, %3 : vector<16x4x32xf32>
    %cst_24 = arith.constant dense<0.000000e+00> : vector<4x32xf32>
    %34 = vector.multi_reduction <add>, %33, %cst_24 [0] : vector<16x4x32xf32> to vector<4x32xf32>
    %35 = arith.addf %31, %34 : vector<4x32xf32>
    %c0_25 = arith.constant 0 : index
    %c0_26 = arith.constant 0 : index
    %36 = vector.load %arg12[%c0_25, %c0_26] : memref<4x32xf32, #tpu.memory_space<vmem>>, vector<4x32xf32>
    tpu.vector_store %arg12[%c0_25, %c0_26], %35 {strides = array<i32>} : memref<4x32xf32, #tpu.memory_space<vmem>>, vector<4x32xf32>,
    %c0_27 = arith.constant 0 : index
    %c0_28 = arith.constant 0 : index
    %c0_29 = arith.constant 0 : index
    %37 = vector.load %arg10[%c0_27, %c0_28, %c0_29] : memref<1x4x1xf32, #tpu.memory_space<vmem>>, vector<1x4x1xf32>
    tpu.vector_store %arg10[%c0_27, %c0_28, %c0_29], %16 {strides = array<i32>} : memref<1x4x1xf32, #tpu.memory_space<vmem>>, vector<1x4x1xf32>,
    %c0_i32_30 = arith.constant 0 : i32
    %38 = arith.cmpi eq, %arg1, %c0_i32_30 : i32
    %39 = arith.extui %38 : i1 to i32
    %c0_i32_31 = arith.constant 0 : i32
    %40 = arith.cmpi ne, %39, %c0_i32_31 : i32
    scf.if %40 {
      %c0_32 = arith.constant 0 : index
      %c0_33 = arith.constant 0 : index
      %41 = vector.load %arg12[%c0_32, %c0_33] : memref<4x32xf32, #tpu.memory_space<vmem>>, vector<4x32xf32>
      %c0_34 = arith.constant 0 : index
      %c0_35 = arith.constant 0 : index
      %c0_36 = arith.constant 0 : index
      %42 = vector.load %arg11[%c0_34, %c0_35, %c0_36] : memref<1x4x1xf32, #tpu.memory_space<vmem>>, vector<1x4x1xf32>
      %43 = vector.shape_cast %42 : vector<1x4x1xf32> to vector<4x1xf32>
      %44 = vector.broadcast %43 : vector<4x1xf32> to vector<4x32xf32>
      %45 = arith.divf %41, %44 : vector<4x32xf32>
      %c0_37 = arith.constant 0 : index
      %c0_38 = arith.constant 0 : index
      %46 = vector.load %arg7[%c0_37, %c0_38] : memref<4x32xf32, #tpu.memory_space<vmem>>, vector<4x32xf32>
      tpu.vector_store %arg7[%c0_37, %c0_38], %45 {strides = array<i32>} : memref<4x32xf32, #tpu.memory_space<vmem>>, vector<4x32xf32>,
    } else {
    }
    return
  }
  func.func @transform_0(%arg0: i32, %arg1: i32) -> (i32, i32) {
    %c0_i32 = arith.constant 0 : i32
    %c0_i32_0 = arith.constant 0 : i32
    return %arg0, %c0_i32 : i32, i32
  }
  func.func @transform_1(%arg0: i32, %arg1: i32) -> (i32, i32) {
    %c0_i32 = arith.constant 0 : i32
    %c0_i32_0 = arith.constant 0 : i32
    %c0_i32_1 = arith.constant 0 : i32
    return %c0_i32, %c0_i32_0 : i32, i32
  }
  func.func @transform_2(%arg0: i32, %arg1: i32) -> (i32, i32) {
    %c0_i32 = arith.constant 0 : i32
    %c0_i32_0 = arith.constant 0 : i32
    %c0_i32_1 = arith.constant 0 : i32
    return %c0_i32, %c0_i32_0 : i32, i32
  }
  func.func @transform_3(%arg0: i32, %arg1: i32) -> (i32, i32, i32) {
    %c0_i32 = arith.constant 0 : i32
    %c0_i32_0 = arith.constant 0 : i32
    return %arg1, %arg0, %c0_i32 : i32, i32, i32
  }
  func.func @transform_4(%arg0: i32, %arg1: i32) -> (i32, i32, i32) {
    %c0_i32 = arith.constant 0 : i32
    %c0_i32_0 = arith.constant 0 : i32
    return %arg1, %arg0, %c0_i32 : i32, i32, i32
  }
  func.func @transform_5(%arg0: i32, %arg1: i32) -> (i32, i32) {
    %c0_i32 = arith.constant 0 : i32
    %c0_i32_0 = arith.constant 0 : i32
    return %arg0, %c0_i32 : i32, i32
  }
  func.func @transform_6(%arg0: i32, %arg1: i32) -> (i32, i32, i32) {
    %c0_i32 = arith.constant 0 : i32
    %c0_i32_0 = arith.constant 0 : i32
    return %arg1, %arg0, %c0_i32 : i32, i32, i32
  }
}

</mosaic_0001>

<bundles_post_ra>
// kernel: tpu_custom_call.1
= control target key start
LH: loop header
LB: loop body
LE: loop exit
PB: predicated region body
PF: predicated region fallthrough
CT: control target
= control target key end

     0   :  { %12 = vsyncpa [#allocation7], 0  ;;  %s1077_s0 = inlined_call_operand.vmem [shape: f32[4,32], index: 0, kind: input, shape index: {}]   ;;  %s1078_s1 = inlined_call_operand.hbm [shape: f32[32,32], index: 1, kind: input, shape index: {}]   ;;  %s1079_s2 = inlined_call_operand.vmem [shape: f32[1,32], index: 2, kind: input, shape index: {}]   ;;  %s1080_s3 = inlined_call_operand.vmem [shape: f32[16,4,32], index: 3, kind: input, shape index: {}]   ;;  %s1081_s4 = inlined_call_operand.vmem [shape: f32[16,4,1], index: 4, kind: input, shape index: {}]   ;;  %s1082_s5 = inlined_call_operand.hbm [shape: f32[4,32], index: 5, kind: output, shape index: {0}]   ;;  %s1083_s6 = inlined_call_operand.vmem [shape: f32[16,4,1], index: 6, kind: output, shape index: {1}]  }
   0x1   :  { %13 = vsyncpa [#allocation8], 0  ;;  %s20_s23 = sshll.u32 %s1078_s1, 4  ;;  %s616_s24 = smov [#allocation6]   ;;  %s21_s23 = int_to_ptr.hbm [resolvable:$true] %s20_s23 }
   0x2   :  { %s22_s25 = sshll.u32 %s616_s24, 4  ;;  %s617_s26 = smov 128   ;;  %s23_s25 = int_to_ptr.vmem [resolvable:$true] %s22_s25 }
   0x3   :  { %s618_s27 = smov 8  }
   0x4   :  { %28 = dma.hbm_to_vmem [thread:$0]  %s21_s23, 512, %s23_s25, [#allocation7], %s617_s26, %s617_s26, %s618_s27  }
   0x5   :  { %612 = dma.done.wait [#allocation7], 512  }
   0x6   :  { %613 = vsyncadd [#allocation7], 4294966784  ;;  %v47_v0 = vld [vmem:[#allocation6 + $0x18] sm:$0xff]  ;;  %v46_v1 = vld [vmem:[#allocation6 + $0x10] sm:$0xff]  ;;  %vm52_vm0 = vcmask 261120   ;;  %vm76_vm1 = vcmask 257024  }
   0x7   :  { %68 = vmatpush.msra.mxu0 %v47_v0  ;;  %v45_v2 = vld [vmem:[#allocation6 + $0x8] sm:$0xff]  ;;  %v44_v3 = vld [vmem:[#allocation6] sm:$0xff]  ;;  %v43_v4 = vld [vmem:[%s1077_s0] sm:$0xf]  ;;  %vm78_vm2 = vcmask 3072   ;;  %s502_s19 = sshll.u32 %s1082_s5, 4  ;;  %s503_s19 = int_to_ptr.hbm [resolvable:$true] %s502_s19 }
   0x8   :  { %v527_v5 = vld [vmem:[%s1079_s2] ss:$0 sm:$0xff]  ;;  %v671_v8 = vld [vmem:[%s1080_s3 + $0x10] sm:$0xf]  ;;  %v676_v9 = vld [vmem:[%s1080_s3 + $0x8] sm:$0xf] }
   0x9   :  { %69 = vmatpush.msra.mxu0 %v46_v1  ;;  %v681_v10 = vld [vmem:[%s1080_s3] sm:$0xf]  ;;  %v692_v18 = vld [vmem:[%s1080_s3 + $0x14] sm:$0xf]  ;;  %v697_v19 = vld [vmem:[%s1080_s3 + $0xc] sm:$0xf] }
   0xa   :  { %v702_v20 = vld [vmem:[%s1080_s3 + $0x4] sm:$0xf]  ;;  %v713_v27 = vld [vmem:[%s1080_s3 + $0x20] sm:$0xf]  ;;  %v718_v28 = vld [vmem:[%s1080_s3 + $0x1c] sm:$0xf] }
   0xb   :  { %70 = vmatpush.msra.mxu0 %v45_v2  ;;  %v723_v29 = vld [vmem:[%s1080_s3 + $0x18] sm:$0xf]  ;;  %v734_v36 = vld [vmem:[%s1080_s3 + $0x2c] sm:$0xf]  ;;  %v739_v37 = vld [vmem:[%s1080_s3 + $0x28] sm:$0xf] }
   0xc   :  { %v744_v38 = vld [vmem:[%s1080_s3 + $0x24] sm:$0xf]  ;;  %v755_v45 = vld [vmem:[%s1080_s3 + $0x38] sm:$0xf]  ;;  %v760_v46 = vld [vmem:[%s1080_s3 + $0x34] sm:$0xf] }
   0xd   :  { %71 = vmatpush.msra.mxu0 %v44_v3  ;;  %v765_v47 = vld [vmem:[%s1080_s3 + $0x30] sm:$0xf]  ;;  %v776_v54 = vld [vmem:[%s1080_s3 + $0x3c] sm:$0xf]  ;;  %v166_v58 = vld [vmem:[%s1081_s4 + $0x8] sm:$0xf] }
   0xe   :  { %516 = vmatmul.msk.f32.vlgmr.msra.gmra.mxu0 %vm52_vm0, %v43_v4  ;;  %v168_v57 = vld [vmem:[%s1081_s4 + $0x10] sm:$0xf]  ;;  %v164_v59 = vld [vmem:[%s1081_s4] sm:$0xf]  ;;  %v169_v2 = vld [vmem:[%s1081_s4 + $0x14] sm:$0xf] }
   0xf   :  { %v167_v3 = vld [vmem:[%s1081_s4 + $0xc] sm:$0xf]  ;;  %v165_v4 = vld [vmem:[%s1081_s4 + $0x4] sm:$0xf] }
  0x8b   :  { %v73_v6 = vpop.f32.mrf.mxu0 }
  0x8c   :  { %v74_v7 = vadd.f32 %v527_v5, %v73_v6 }
  0x8e   :  { %77 = vst.msk [vmem:[#allocation2] sm:$0xf] %vm76_vm1, %v74_v7  ;;  %v619_v7 = vmov -2.3819763e+38  }
  0x8f   :  { %79 = vst.msk [vmem:[#allocation3] sm:$0xf] %vm78_vm2, %v619_v7  ;;  %v179_v7 = vld [vmem:[%s1081_s4 + $0x3c] sm:$0xf] }
  0x95   :  { %v98_v11 = vld [vmem:[#allocation2] sm:$0xf] }
  0x96   :  { %v103_v12 = vmul.f32 %v98_v11, %v671_v8  ;;  %v101_v13 = vmul.f32 %v98_v11, %v676_v9  ;;  %v99_v14 = vmul.f32 %v98_v11, %v681_v10  ;;  %v104_v21 = vmul.f32 %v98_v11, %v692_v18 }
  0x97   :  { %v102_v22 = vmul.f32 %v98_v11, %v697_v19  ;;  %v100_v23 = vmul.f32 %v98_v11, %v702_v20  ;;  %v107_v30 = vmul.f32 %v98_v11, %v713_v27  ;;  %v106_v31 = vmul.f32 %v98_v11, %v718_v28 }
  0x98   :  { %v128_v15 = vsel %vm76_vm1, %v103_v12, 0.0  ;;  %v122_v16 = vsel %vm76_vm1, %v101_v13, 0.0  ;;  %v116_v17 = vsel %vm76_vm1, %v99_v14, 0.0  ;;  %v131_v24 = vsel %vm76_vm1, %v104_v21, 0.0 }
  0x99   :  { %129 = vadd.xlane.f32.xlu2 %v128_v15  ;;  %123 = vadd.xlane.f32.xlu1 %v122_v16  ;;  %v125_v25 = vsel %vm76_vm1, %v102_v22, 0.0  ;;  %v119_v26 = vsel %vm76_vm1, %v100_v23, 0.0  ;;  %v105_v32 = vmul.f32 %v98_v11, %v723_v29  ;;  %v140_v33 = vsel %vm76_vm1, %v107_v30, 0.0  ;;  %v172_v15 = vld [vmem:[%s1081_s4 + $0x20] sm:$0xf] }
  0x9a   :  { %117 = vadd.xlane.f32.xlu0 %v116_v17  ;;  %v137_v34 = vsel %vm76_vm1, %v106_v31, 0.0  ;;  %v110_v39 = vmul.f32 %v98_v11, %v734_v36  ;;  %v109_v40 = vmul.f32 %v98_v11, %v739_v37  ;;  %v108_v41 = vmul.f32 %v98_v11, %v744_v38  ;;  %v171_v16 = vld [vmem:[%s1081_s4 + $0x1c] sm:$0xf]  ;;  %v170_v17 = vld [vmem:[%s1081_s4 + $0x18] sm:$0xf] }
  0x9b   :  { %v134_v35 = vsel %vm76_vm1, %v105_v32, 0.0  ;;  %v113_v48 = vmul.f32 %v98_v11, %v755_v45  ;;  %v112_v49 = vmul.f32 %v98_v11, %v760_v46  ;;  %v111_v50 = vmul.f32 %v98_v11, %v765_v47  ;;  %v175_v30 = vld [vmem:[%s1081_s4 + $0x2c] sm:$0xf]  ;;  %v174_v31 = vld [vmem:[%s1081_s4 + $0x28] sm:$0xf] }
  0x9c   :  { %v149_v42 = vsel %vm76_vm1, %v110_v39, 0.0  ;;  %v146_v43 = vsel %vm76_vm1, %v109_v40, 0.0  ;;  %v143_v44 = vsel %vm76_vm1, %v108_v41, 0.0  ;;  %v114_v55 = vmul.f32 %v98_v11, %v776_v54  ;;  %v173_v32 = vld [vmem:[%s1081_s4 + $0x24] sm:$0xf] }
  0x9d   :  { %v158_v51 = vsel %vm76_vm1, %v113_v48, 0.0  ;;  %v155_v52 = vsel %vm76_vm1, %v112_v49, 0.0  ;;  %v152_v53 = vsel %vm76_vm1, %v111_v50, 0.0 }
  0x9e   :  { %v161_v56 = vsel %vm76_vm1, %v114_v55, 0.0 }
  0xa1   :  { %132 = vadd.xlane.f32.xlu2 %v131_v24  ;;  %126 = vadd.xlane.f32.xlu1 %v125_v25 }
  0xa2   :  { %120 = vadd.xlane.f32.xlu0 %v119_v26 }
  0xa9   :  { %141 = vadd.xlane.f32.xlu2 %v140_v33  ;;  %138 = vadd.xlane.f32.xlu1 %v137_v34 }
  0xaa   :  { %135 = vadd.xlane.f32.xlu0 %v134_v35 }
  0xb1   :  { %150 = vadd.xlane.f32.xlu2 %v149_v42  ;;  %147 = vadd.xlane.f32.xlu1 %v146_v43  ;;  %v178_v42 = vld [vmem:[%s1081_s4 + $0x38] sm:$0xf]  ;;  %v177_v43 = vld [vmem:[%s1081_s4 + $0x34] sm:$0xf] }
  0xb2   :  { %144 = vadd.xlane.f32.xlu0 %v143_v44  ;;  %v176_v44 = vld [vmem:[%s1081_s4 + $0x30] sm:$0xf] }
  0xb9   :  { %159 = vadd.xlane.f32.xlu2 %v158_v51  ;;  %156 = vadd.xlane.f32.xlu1 %v155_v52 }
  0xba   :  { %153 = vadd.xlane.f32.xlu0 %v152_v53 }
  0xc2   :  { %162 = vadd.xlane.f32.xlu0 %v161_v56 }
 0x10c   :  { %v130_v60 = vpop.xlane.xlu2 %129  ;;  %v124_v61 = vpop.xlane.xlu1 %123 }
 0x10d   :  { %v789_v62 = vadd.f32 %v168_v57, %v130_v60  ;;  %v791_v63 = vadd.f32 %v166_v58, %v124_v61  ;;  %v118_v0 = vpop.xlane.xlu0 %117 }
 0x10e   :  { %v793_v1 = vadd.f32 %v164_v59, %v118_v0 }
 0x10f   :  { %201 = vst.msk [vmem:[%s1083_s6 + $0x10] sm:$0xf] %vm78_vm2, %v789_v62  ;;  %v218_v55 = vsel %vm78_vm2, %v789_v62, -inf  ;;  %v216_v59 = vsel %vm78_vm2, %v791_v63, -inf }
 0x110   :  { %199 = vst.msk [vmem:[%s1083_s6 + $0x8] sm:$0xf] %vm78_vm2, %v791_v63  ;;  %v214_v56 = vsel %vm78_vm2, %v793_v1, -inf }
 0x111   :  { %197 = vst.msk [vmem:[%s1083_s6] sm:$0xf] %vm78_vm2, %v793_v1 }
 0x114   :  { %v133_v5 = vpop.xlane.xlu2 %132  ;;  %v127_v6 = vpop.xlane.xlu1 %126 }
 0x115   :  { %v820_v11 = vadd.f32 %v169_v2, %v133_v5  ;;  %v822_v12 = vadd.f32 %v167_v3, %v127_v6  ;;  %v121_v13 = vpop.xlane.xlu0 %120  ;;  %v219_v3 = vmax.f32 %v214_v56, %v218_v55  ;;  %v213_v56 = vld [vmem:[#allocation3] sm:$0xf] }
 0x116   :  { %v824_v14 = vadd.f32 %v165_v4, %v121_v13 }
 0x117   :  { %202 = vst.msk [vmem:[%s1083_s6 + $0x14] sm:$0xf] %vm78_vm2, %v820_v11  ;;  %v220_v57 = vsel %vm78_vm2, %v820_v11, -inf  ;;  %v217_v4 = vsel %vm78_vm2, %v822_v12, -inf }
 0x118   :  { %200 = vst.msk [vmem:[%s1083_s6 + $0xc] sm:$0xf] %vm78_vm2, %v822_v12  ;;  %v215_v58 = vsel %vm78_vm2, %v824_v14, -inf }
 0x119   :  { %198 = vst.msk [vmem:[%s1083_s6 + $0x4] sm:$0xf] %vm78_vm2, %v824_v14  ;;  %v221_v5 = vmax.f32 %v215_v58, %v220_v57  ;;  %v621_v57 = vmov 0  }
 0x11a   :  { %526 = vset.pattern.permute.xlu0 %v621_v57  ;;  %525 = vset.pattern.permute.xlu2 %v621_v57 }
 0x11b   :  { %524 = vset.pattern.permute.xlu1 %v621_v57 }
 0x11c   :  { %v142_v21 = vpop.xlane.xlu2 %141  ;;  %v139_v22 = vpop.xlane.xlu1 %138 }
 0x11d   :  { %v850_v23 = vadd.f32 %v172_v15, %v142_v21  ;;  %v852_v24 = vadd.f32 %v171_v16, %v139_v22  ;;  %v136_v25 = vpop.xlane.xlu0 %135 }
 0x11e   :  { %v854_v26 = vadd.f32 %v170_v17, %v136_v25 }
 0x11f   :  { %205 = vst.msk [vmem:[%s1083_s6 + $0x20] sm:$0xf] %vm78_vm2, %v850_v23  ;;  %v226_v60 = vsel %vm78_vm2, %v850_v23, -inf  ;;  %v224_v61 = vsel %vm78_vm2, %v852_v24, -inf }
 0x120   :  { %204 = vst.msk [vmem:[%s1083_s6 + $0x1c] sm:$0xf] %vm78_vm2, %v852_v24  ;;  %v222_v0 = vsel %vm78_vm2, %v854_v26, -inf  ;;  %v227_v17 = vmax.f32 %v219_v3, %v226_v60  ;;  %v225_v21 = vmax.f32 %v217_v4, %v224_v61 }
 0x121   :  { %203 = vst.msk [vmem:[%s1083_s6 + $0x18] sm:$0xf] %vm78_vm2, %v854_v26  ;;  %v223_v22 = vmax.f32 %v216_v59, %v222_v0 }
 0x124   :  { %v151_v33 = vpop.xlane.xlu2 %150  ;;  %v148_v34 = vpop.xlane.xlu1 %147 }
 0x125   :  { %v880_v35 = vadd.f32 %v175_v30, %v151_v33  ;;  %v882_v39 = vadd.f32 %v174_v31, %v148_v34  ;;  %v145_v40 = vpop.xlane.xlu0 %144  ;;  %v620_v31 = vmov 0.0  }
 0x126   :  { %v884_v41 = vadd.f32 %v173_v32, %v145_v40  ;;  %80 = vst.msk [vmem:[#allocation4] sm:$0xf] %vm78_vm2, %v620_v31 }
 0x127   :  { %208 = vst.msk [vmem:[%s1083_s6 + $0x2c] sm:$0xf] %vm78_vm2, %v880_v35  ;;  %v232_v6 = vsel %vm78_vm2, %v880_v35, -inf  ;;  %v230_v13 = vsel %vm78_vm2, %v882_v39, -inf }
 0x128   :  { %207 = vst.msk [vmem:[%s1083_s6 + $0x28] sm:$0xf] %vm78_vm2, %v882_v39  ;;  %v228_v2 = vsel %vm78_vm2, %v884_v41, -inf  ;;  %v233_v34 = vmax.f32 %v225_v21, %v232_v6  ;;  %v231_v40 = vmax.f32 %v223_v22, %v230_v13 }
 0x129   :  { %206 = vst.msk [vmem:[%s1083_s6 + $0x24] sm:$0xf] %vm78_vm2, %v884_v41  ;;  %v229_v25 = vmax.f32 %v221_v5, %v228_v2 }
 0x12a   :  { %81 = vst.msk [vmem:[#allocation5] sm:$0xf] %vm76_vm1, %v620_v31 }
 0x12c   :  { %v160_v48 = vpop.xlane.xlu2 %159  ;;  %v157_v49 = vpop.xlane.xlu1 %156 }
 0x12d   :  { %v910_v50 = vadd.f32 %v178_v42, %v160_v48  ;;  %v912_v51 = vadd.f32 %v177_v43, %v157_v49  ;;  %v154_v52 = vpop.xlane.xlu0 %153 }
 0x12e   :  { %v914_v53 = vadd.f32 %v176_v44, %v154_v52 }
 0x12f   :  { %211 = vst.msk [vmem:[%s1083_s6 + $0x38] sm:$0xf] %vm78_vm2, %v910_v50  ;;  %v236_v15 = vsel %vm78_vm2, %v912_v51, -inf  ;;  %v238_v32 = vsel %vm78_vm2, %v910_v50, -inf }
 0x130   :  { %210 = vst.msk [vmem:[%s1083_s6 + $0x34] sm:$0xf] %vm78_vm2, %v912_v51  ;;  %v234_v16 = vsel %vm78_vm2, %v914_v53, -inf  ;;  %v237_v42 = vmax.f32 %v229_v25, %v236_v15  ;;  %v239_v48 = vmax.f32 %v231_v40, %v238_v32 }
 0x131   :  { %209 = vst.msk [vmem:[%s1083_s6 + $0x30] sm:$0xf] %vm78_vm2, %v914_v53  ;;  %v235_v43 = vmax.f32 %v227_v17, %v234_v16 }
 0x133   :  { %v242_v52 = vmax.f32 %v235_v43, %v237_v42 }
 0x135   :  { %v163_v30 = vpop.xlane.xlu0 %162 }
 0x136   :  { %v965_v33 = vadd.f32 %v179_v7, %v163_v30 }
 0x138   :  { %212 = vst.msk [vmem:[%s1083_s6 + $0x3c] sm:$0xf] %vm78_vm2, %v965_v33  ;;  %v240_v44 = vsel %vm78_vm2, %v965_v33, -inf  ;;  %s622_s6 = smov [#allocation9]  }
 0x139   :  { %v241_v49 = vmax.f32 %v233_v34, %v240_v44  ;;  %s500_s16 = sshll.u32 %s622_s6, 4  ;;  %s501_s16 = int_to_ptr.vmem [resolvable:$true] %s500_s16 }
 0x13b   :  { %v243_v55 = vmax.f32 %v239_v48, %v241_v49 }
 0x13d   :  { %v244_v58 = vmax.f32 %v242_v52, %v243_v55 }
 0x13f   :  { %v975_v59 = vmax.f32 %v213_v56, %v244_v58 }
 0x141   :  { %v249_v60 = vsub.f32 %v793_v1, %v975_v59  ;;  %v250_v61 = vsub.f32 %v824_v14, %v975_v59  ;;  %v251_v0 = vsub.f32 %v791_v63, %v975_v59  ;;  %468 = vst.msk [vmem:[#allocation3] sm:$0xf] %vm78_vm2, %v975_v59  ;;  %v252_v2 = vsub.f32 %v822_v12, %v975_v59 }
 0x142   :  { %v253_v3 = vsub.f32 %v789_v62, %v975_v59  ;;  %v254_v1 = vsub.f32 %v820_v11, %v975_v59  ;;  %v255_v14 = vsub.f32 %v854_v26, %v975_v59  ;;  %v257_v63 = vsub.f32 %v850_v23, %v975_v59 }
 0x143   :  { %v265_v4 = vmul.f32 1.442695, %v249_v60  ;;  %v267_v5 = vmul.f32 1.442695, %v250_v61  ;;  %v269_v6 = vmul.f32 1.442695, %v251_v0  ;;  %v256_v62 = vsub.f32 %v852_v24, %v975_v59 }
 0x144   :  { %v271_v7 = vmul.f32 1.442695, %v252_v2  ;;  %v273_v13 = vmul.f32 1.442695, %v253_v3  ;;  %v275_v12 = vmul.f32 1.442695, %v254_v1  ;;  %v258_v17 = vsub.f32 %v884_v41, %v975_v59 }
 0x145   :  { %528 = vpow2.f32 %v265_v4  ;;  %v277_v15 = vmul.f32 1.442695, %v255_v14  ;;  %v281_v16 = vmul.f32 1.442695, %v257_v63  ;;  %v259_v21 = vsub.f32 %v882_v39, %v975_v59 }
 0x146   :  { %530 = vpow2.f32 %v267_v5  ;;  %v279_v23 = vmul.f32 1.442695, %v256_v62  ;;  %v246_v30 = vsub.f32 %v213_v56, %v975_v59  ;;  %v260_v41 = vsub.f32 %v880_v35, %v975_v59 }
 0x147   :  { %532 = vpow2.f32 %v269_v6  ;;  %v283_v39 = vmul.f32 1.442695, %v258_v17  ;;  %v285_v42 = vmul.f32 1.442695, %v259_v21  ;;  %v261_v52 = vsub.f32 %v914_v53, %v975_v59 }
 0x148   :  { %534 = vpow2.f32 %v271_v7  ;;  %v247_v48 = vmul.f32 1.442695, %v246_v30  ;;  %v287_v55 = vmul.f32 1.442695, %v260_v41  ;;  %v262_v60 = vsub.f32 %v912_v51, %v975_v59 }
 0x149   :  { %536 = vpow2.f32 %v273_v13  ;;  %v263_v53 = vsub.f32 %v910_v50, %v975_v59  ;;  %v289_v3 = vmul.f32 1.442695, %v261_v52  ;;  %v264_v51 = vsub.f32 %v965_v33, %v975_v59 }
 0x14a   :  { %538 = vpow2.f32 %v275_v12  ;;  %v291_v6 = vmul.f32 1.442695, %v262_v60 }
 0x14b   :  { %v529_v11 = vpop.eup %528  ;;  %540 = vpow2.f32 %v277_v15  ;;  %v293_v13 = vmul.f32 1.442695, %v263_v53 }
 0x14c   :  { %v531_v26 = vpop.eup %530  ;;  %v299_v22 = vsel %vm78_vm2, %v529_v11, 0.0  ;;  %341 = vperm.xlu2 %525, %v529_v11   ;;  %542 = vpow2.f32 %v281_v16  ;;  %v295_v16 = vmul.f32 1.442695, %v264_v51 }
 0x14d   :  { %v533_v25 = vpop.eup %532  ;;  %v300_v24 = vsel %vm78_vm2, %v531_v26, 0.0  ;;  %346 = vperm.xlu0 %526, %v531_v26   ;;  %544 = vpow2.f32 %v279_v23 }
 0x14e   :  { %v1004_v31 = vpop.eup %534  ;;  %v301_v32 = vadd.f32 %v300_v24, %v299_v22  ;;  %v302_v34 = vsel %vm78_vm2, %v533_v25, 0.0  ;;  %546 = vpow2.f32 %v283_v39 }
 0x14f   :  { %v537_v40 = vpop.eup %536  ;;  %v304_v44 = vsel %vm78_vm2, %v1004_v31, 0.0  ;;  %548 = vpow2.f32 %v285_v42  ;;  %v297_v42 = vld [vmem:[#allocation4] sm:$0xf] }
 0x150   :  { %v303_v43 = vadd.f32 %v302_v34, %v301_v32  ;;  %v1011_v49 = vpop.eup %538  ;;  %v306_v57 = vsel %vm78_vm2, %v537_v40, 0.0  ;;  %550 = vpow2.f32 %v247_v48 }
 0x151   :  { %v541_v56 = vpop.eup %540  ;;  %v308_v0 = vsel %vm78_vm2, %v1011_v49, 0.0  ;;  %552 = vpow2.f32 %v287_v55 }
 0x152   :  { %v305_v35 = vadd.f32 %v304_v44, %v303_v43  ;;  %v543_v58 = vpop.eup %542  ;;  %v310_v5 = vsel %vm78_vm2, %v541_v56, 0.0  ;;  %554 = vpow2.f32 %v289_v3 }
 0x153   :  { %v545_v2 = vpop.eup %544  ;;  %v314_v50 = vsel %vm78_vm2, %v543_v58, 0.0  ;;  %556 = vpow2.f32 %v291_v6 }
 0x154   :  { %v307_v61 = vadd.f32 %v306_v57, %v305_v35  ;;  %351 = vperm.xlu2 %525, %v533_v25   ;;  %v547_v7 = vpop.eup %546  ;;  %v312_v14 = vsel %vm78_vm2, %v545_v2, 0.0  ;;  %558 = vpow2.f32 %v293_v13 }
 0x155   :  { %381 = vperm.xlu0 %526, %v543_v58   ;;  %v549_v63 = vpop.eup %548  ;;  %v316_v33 = vsel %vm78_vm2, %v547_v7, 0.0  ;;  %560 = vpow2.f32 %v295_v16 }
 0x156   :  { %v309_v4 = vadd.f32 %v308_v0, %v307_v61  ;;  %v551_v12 = vpop.eup %550  ;;  %v318_v17 = vsel %vm78_vm2, %v549_v63, 0.0 }
 0x157   :  { %v553_v15 = vpop.eup %552  ;;  %335 = vperm.xlu1 %524, %v551_v12   ;;  %v298_v52 = vmul.f32 %v551_v12, %v297_v42 }
 0x158   :  { %v311_v1 = vadd.f32 %v310_v5, %v309_v4  ;;  %v555_v26 = vpop.eup %554  ;;  %v320_v23 = vsel %vm78_vm2, %v553_v15, 0.0 }
 0x159   :  { %v557_v22 = vpop.eup %556  ;;  %v322_v24 = vsel %vm78_vm2, %v555_v26, 0.0 }
 0x15a   :  { %v313_v62 = vadd.f32 %v312_v14, %v311_v1  ;;  %v559_v30 = vpop.eup %558  ;;  %v324_v32 = vsel %vm78_vm2, %v557_v22, 0.0 }
 0x15b   :  { %v561_v39 = vpop.eup %560 }
 0x15c   :  { %v315_v11 = vadd.f32 %v314_v50, %v313_v62  ;;  %361 = vperm.xlu2 %525, %v537_v40   ;;  %v326_v40 = vsel %vm78_vm2, %v559_v30, 0.0  ;;  %v328_v44 = vsel %vm78_vm2, %v561_v39, 0.0 }
 0x15d   :  { %396 = vperm.xlu0 %526, %v553_v15  }
 0x15e   :  { %v317_v59 = vadd.f32 %v316_v33, %v315_v11 }
 0x15f   :  { %356 = vperm.xlu1 %524, %v1004_v31  }
 0x160   :  { %v319_v21 = vadd.f32 %v318_v17, %v317_v59 }
 0x162   :  { %v321_v25 = vadd.f32 %v320_v23, %v319_v21 }
 0x164   :  { %v323_v41 = vadd.f32 %v322_v24, %v321_v25  ;;  %371 = vperm.xlu2 %525, %v541_v56  }
 0x165   :  { %411 = vperm.xlu0 %526, %v559_v30  }
 0x166   :  { %v325_v34 = vadd.f32 %v324_v32, %v323_v41 }
 0x167   :  { %366 = vperm.xlu1 %524, %v1011_v49  }
 0x168   :  { %v327_v43 = vadd.f32 %v326_v40, %v325_v34 }
 0x16a   :  { %v329_v48 = vadd.f32 %v328_v44, %v327_v43 }
 0x16c   :  { %v330_v55 = vadd.f32 %v329_v48, %v298_v52  ;;  %386 = vperm.xlu2 %525, %v547_v7  }
 0x16e   :  { %331 = vst.msk [vmem:[#allocation4] sm:$0xf] %vm78_vm2, %v330_v55 }
 0x16f   :  { %376 = vperm.xlu1 %524, %v545_v2  }
 0x174   :  { %401 = vperm.xlu2 %525, %v555_v26  }
 0x175   :  { %v473_v31 = vld [vmem:[#allocation4] sm:$0xf] }
 0x177   :  { %391 = vperm.xlu1 %524, %v549_v63  }
 0x17c   :  { %476 = vperm.xlu2 %525, %v473_v31  }
 0x17f   :  { %406 = vperm.xlu1 %524, %v557_v22  }
 0x187   :  { %416 = vperm.xlu1 %524, %v561_v39  }
 0x1a6   :  { %v342_v35 = vpop.permute.xlu2 %341 }
 0x1a7   :  { %v419_v49 = vmul.f32 %v342_v35, %v681_v10 }
 0x1a9   :  { %v435_v3 = vsel %vm76_vm1, %v419_v49, 0.0 }
 0x1ae   :  { %v352_v56 = vpop.permute.xlu2 %351 }
 0x1af   :  { %v421_v4 = vmul.f32 %v352_v56, %v676_v9 }
 0x1b1   :  { %v438_v1 = vsel %vm76_vm1, %v421_v4, 0.0 }
 0x1b6   :  { %v362_v57 = vpop.permute.xlu2 %361 }
 0x1be   :  { %v372_v61 = vpop.permute.xlu2 %371 }
 0x1bf   :  { %v347_v58 = vpop.permute.xlu0 %346 }
 0x1c0   :  { %v420_v0 = vmul.f32 %v347_v58, %v702_v20  ;;  %v423_v20 = vmul.f32 %v362_v57, %v671_v8  ;;  %v332_v58 = vld [vmem:[#allocation5] sm:$0xf] }
 0x1c2   :  { %v436_v53 = vsel %vm76_vm1, %v420_v0, 0.0  ;;  %v442_v62 = vsel %vm76_vm1, %v423_v20, 0.0 }
 0x1c3   :  { %v437_v51 = vadd.f32 %v436_v53, %v435_v3 }
 0x1c5   :  { %v439_v14 = vadd.f32 %v438_v1, %v437_v51 }
 0x1c6   :  { %v387_v6 = vpop.permute.xlu2 %386 }
 0x1c7   :  { %v382_v50 = vpop.permute.xlu0 %381  ;;  %v428_v23 = vmul.f32 %v387_v6, %v744_v38 }
 0x1c8   :  { %v427_v59 = vmul.f32 %v382_v50, %v713_v27 }
 0x1c9   :  { %v1037_v60 = vpop.permute.xlu1 %335  ;;  %v452_v30 = vsel %vm76_vm1, %v428_v23, 0.0 }
 0x1ca   :  { %v450_v21 = vsel %vm76_vm1, %v427_v59, 0.0  ;;  %v338_v49 = vmul.f32 %v1037_v60, %v332_v58 }
 0x1ce   :  { %v402_v15 = vpop.permute.xlu2 %401 }
 0x1cf   :  { %v431_v40 = vmul.f32 %v402_v15, %v765_v47 }
 0x1d1   :  { %v357_v2 = vpop.permute.xlu1 %356  ;;  %v458_v52 = vsel %vm76_vm1, %v431_v40, 0.0 }
 0x1d2   :  { %v422_v5 = vmul.f32 %v357_v2, %v697_v19  ;;  %v425_v19 = vmul.f32 %v372_v61, %v723_v29  ;;  %v397_v29 = vpop.permute.xlu0 %396 }
 0x1d3   :  { %v430_v27 = vmul.f32 %v397_v29, %v734_v36 }
 0x1d4   :  { %v440_v7 = vsel %vm76_vm1, %v422_v5, 0.0  ;;  %v446_v33 = vsel %vm76_vm1, %v425_v19, 0.0 }
 0x1d5   :  { %v441_v63 = vadd.f32 %v440_v7, %v439_v14  ;;  %v456_v34 = vsel %vm76_vm1, %v430_v27, 0.0 }
 0x1d6   :  { %v477_v25 = vpop.permute.xlu2 %476 }
 0x1d7   :  { %v443_v9 = vadd.f32 %v442_v62, %v441_v63  ;;  %562 = vrcp.f32 %v477_v25  ;;  %vm484_vm4 = vweird.f32 %v477_v25  ;;  %v488_v5 = vand.u32 2147483647, %v477_v25 }
 0x1d9   :  { %v367_v10 = vpop.permute.xlu1 %366  ;;  %vm489_vm6 = vcmp.eq.f32.partialorder %v488_v5, 8.507059e+37 }
 0x1da   :  { %v424_v13 = vmul.f32 %v367_v10, %v692_v18  ;;  %v412_v48 = vpop.permute.xlu0 %411 }
 0x1db   :  { %v433_v31 = vmul.f32 %v412_v48, %v755_v45  ;;  %v490_v45 = vand.u32 2147483648, %v477_v25 }
 0x1dc   :  { %v444_v12 = vsel %vm76_vm1, %v424_v13, 0.0 }
 0x1dd   :  { %v445_v16 = vadd.f32 %v444_v12, %v443_v9  ;;  %v563_v43 = vpop.eup %562  ;;  %v462_v47 = vsel %vm76_vm1, %v433_v31, 0.0  ;;  %v491_v6 = vor.u32 1.1754944e-38, %v490_v45 }
 0x1de   :  { %v480_v55 = vmul.f32 %v563_v43, %v477_v25  ;;  %vm485_vm3 = vweird.f32 %v563_v43 }
 0x1df   :  { %v447_v17 = vadd.f32 %v446_v33, %v445_v16  ;;  %vm486_vm5 = vmor %vm484_vm4, %vm485_vm3 }
 0x1e0   :  { %v481_v56 = vsub.f32 1.0, %v480_v55 }
 0x1e1   :  { %v377_v11 = vpop.permute.xlu1 %376 }
 0x1e2   :  { %v426_v8 = vmul.f32 %v377_v11, %v718_v28  ;;  %v482_v53 = vmul.f32 %v563_v43, %v481_v56 }
 0x1e4   :  { %v448_v18 = vsel %vm76_vm1, %v426_v8, 0.0  ;;  %v483_v4 = vadd.f32 %v563_v43, %v482_v53 }
 0x1e5   :  { %v449_v26 = vadd.f32 %v448_v18, %v447_v17 }
 0x1e6   :  { %v487_v51 = vsel %vm486_vm5, %v563_v43, %v483_v4 }
 0x1e7   :  { %v451_v22 = vadd.f32 %v450_v21, %v449_v26 }
 0x1e9   :  { %v392_v24 = vpop.permute.xlu1 %391  ;;  %v453_v32 = vadd.f32 %v452_v30, %v451_v22 }
 0x1ea   :  { %v429_v41 = vmul.f32 %v392_v24, %v739_v37 }
 0x1ec   :  { %v454_v28 = vsel %vm76_vm1, %v429_v41, 0.0 }
 0x1ed   :  { %v455_v39 = vadd.f32 %v454_v28, %v453_v32 }
 0x1ef   :  { %v457_v38 = vadd.f32 %v456_v34, %v455_v39 }
 0x1f1   :  { %v407_v42 = vpop.permute.xlu1 %406  ;;  %v459_v36 = vadd.f32 %v458_v52, %v457_v38 }
 0x1f2   :  { %v432_v44 = vmul.f32 %v407_v42, %v760_v46 }
 0x1f4   :  { %v460_v37 = vsel %vm76_vm1, %v432_v44, 0.0 }
 0x1f5   :  { %v461_v35 = vadd.f32 %v460_v37, %v459_v36 }
 0x1f7   :  { %v463_v0 = vadd.f32 %v462_v47, %v461_v35 }
 0x1f9   :  { %v417_v57 = vpop.permute.xlu1 %416 }
 0x1fa   :  { %v434_v61 = vmul.f32 %v417_v57, %v776_v54  ;;  %v492_v54 = vsel %vm489_vm6, %v491_v6, %v487_v51 }
 0x1fc   :  { %v464_v46 = vsel %vm76_vm1, %v434_v61, 0.0 }
 0x1fd   :  { %v465_v2 = vadd.f32 %v464_v46, %v463_v0 }
 0x1ff   :  { %v466_v3 = vadd.f32 %v465_v2, %v338_v49 }
 0x201   :  { %467 = vst.msk [vmem:[#allocation5] sm:$0xf] %vm76_vm1, %v466_v3 }
 0x208   :  { %v472_v60 = vld [vmem:[#allocation5] sm:$0xf] }
 0x209   :  { %v493_v1 = vmul.f32 %v492_v54, %v472_v60 }
 0x20b   :  { %494 = vst.msk [vmem:[#allocation9] sm:$0xf] %vm76_vm1, %v493_v1 }
 0x20c   :  { %505 = dma.vmem_to_hbm [thread:$0]  %s501_s16, 64, %s503_s19, [#allocation8]  }
 0x20d   :  { %614 = dma.done.wait [#allocation8], 64  }
 0x20e   :  { %615 = vsyncadd [#allocation8], 4294967232 }
 0x20f   :  { %514 = vsyncpa [#allocation7], 1 }
 0x210   :  { %515 = vsyncpa [#allocation8], 1 }

</bundles_post_ra>
